<compile_context>
chip_gen: v7x
topology: tpu7x:2x2x1
jax: 0.10.0
libtpu: 0.0.40
codegen_flags: <defaults>
</compile_context>

<pallas_src>
import jax
import jax.numpy as jnp
from jax.experimental import pallas as pl
from jax.experimental.pallas import tpu as pltpu


def model_kernel(x_ref, op_ref, w_ref, o_ref):
    # x_ref:  (Bt, C, St, 128) VMEM - sublane/lane-dense pixel slabs, per channel
    # op_ref: (St, 128)        VMEM - other @ w2 + fused bias (shared across batch)
    # w_ref:  (C,)             SMEM - fused weight  w1 @ w2
    # o_ref:  (Bt, St, 128)    VMEM - sigmoid output
    x = x_ref[...]                              # (Bt, C, St, 128)
    acc = op_ref[...][None, :, :]               # (1, St, 128), broadcast over Bt
    for c in range(x.shape[1]):                 # C tiny & static -> unrolled FMAs
        acc = acc + x[:, c] * w_ref[c]
    # sigmoid(z) = 0.5 * (tanh(z/2) + 1): one EUP tanh push, no divide.
    o_ref[...] = 0.5 * (jnp.tanh(0.5 * acc) + 1.0)


def model_forward(x_nchw, other_nchw, w1, b1, w2, b2):
    """x: (B, C, H, W); other: (1, F, H, W); weights stored as (in, out).

    Returns sigmoid(linear2(linear1(x) + other)) applied per pixel over channels,
    with output shape (B, 1, H, W).
    """
    B, C, H, W = x_nchw.shape
    F = w1.shape[1]                  # linear1 out features (== other channel dim)
    HW = H * W
    LANE, SUB = 128, 8

    # ---- fold both linears + bias in the wrapper (no MXU work in-kernel) -------
    w_eff = (w1 @ w2).reshape(C).astype(jnp.float32)                    # (C,)
    b_eff = (b1 @ w2 + b2).reshape(()).astype(jnp.float32)              # scalar
    op = (
        jnp.einsum(
            "fp,f->p",
            other_nchw[0].reshape(F, HW).astype(jnp.float32),
            w2[:, 0].astype(jnp.float32),
        )
        + b_eff
    )                                                                    # (HW,)

    x_flat = x_nchw.reshape(B, C, HW).astype(jnp.float32)  # contiguous, no transpose

    # ---- sublane/lane-dense pixel layout: pad HW -> R*128, R a multiple of 8 ---
    R = pl.cdiv(HW, LANE)
    R = ((R + SUB - 1) // SUB) * SUB
    ROW_CAP = 1024                    # 1024 rows * 128 lanes ~ 2.5 MiB stream/step
    if R > ROW_CAP:
        st = ROW_CAP
        R = ((R + st - 1) // st) * st
    else:
        st = R
    HW_pad = R * LANE
    num_row_tiles = R // st

    if HW_pad != HW:
        pad = HW_pad - HW
        x_flat = jnp.pad(x_flat, ((0, 0), (0, 0), (0, pad)))
        op = jnp.pad(op, ((0, pad),))
    x4 = x_flat.reshape(B, C, R, LANE)
    op2 = op.reshape(R, LANE)

    # ---- batch tiling: amortize per-step overhead, keep >=2 parallel steps -----
    bytes_per_b = (C + 1) * st * LANE * 4           # x + out stream per batch elem
    bt_cap = max(1, (2 << 20) // bytes_per_b)       # ~2 MiB x/out per grid step
    bt = 1
    for d in range(1, B + 1):
        if B % d != 0 or d > bt_cap:
            continue
        steps = (B // d) * num_row_tiles
        if steps >= 2 or B * num_row_tiles < 2:     # keep megacore fed on v7x
            bt = d
    nb = B // bt

    smem_spec = pl.BlockSpec(memory_space=pltpu.MemorySpace.SMEM)

    out = pl.pallas_call(
        model_kernel,
        out_shape=jax.ShapeDtypeStruct((B, R, LANE), jnp.float32),
        grid=(num_row_tiles, nb),        # batch innermost: op block reused across b
        in_specs=[
            pl.BlockSpec((bt, C, st, LANE), lambda t, b: (b, 0, t, 0)),
            pl.BlockSpec((st, LANE), lambda t, b: (t, 0)),   # constant over inner b
            smem_spec,                                        # w_eff (C scalars)
        ],
        out_specs=pl.BlockSpec((bt, st, LANE), lambda t, b: (b, t, 0)),
        compiler_params=pltpu.CompilerParams(
            dimension_semantics=("parallel", "parallel")),
    )(x4, op2, w_eff)

    return out.reshape(B, HW_pad)[:, :HW].reshape(B, 1, H, W)


def reference_forward(x_nchw, other_nchw, w1, b1, w2, b2):
    # Unfused reference in plain JAX (channels-last internally).
    x = jnp.transpose(x_nchw, (0, 2, 3, 1)).astype(jnp.float32)       # (B,H,W,C)
    other = jnp.transpose(other_nchw, (0, 2, 3, 1)).astype(jnp.float32)
    v1 = x @ w1 + b1[0]
    v2 = v1 + other
    v3 = v2 @ w2 + b2[0]
    out = jax.nn.sigmoid(v3)                                          # (B,H,W,1)
    return jnp.transpose(out, (0, 3, 1, 2))                           # (B,1,H,W)


if __name__ == "__main__":
    # channels=3, h=w=64 per the spec; small batch of 2.
    B, C, H, W = 2, 3, 64, 64

    key = jax.random.PRNGKey(0)
    kx, ko, kw1, kb1, kw2, kb2 = jax.random.split(key, 6)

    x = jax.random.normal(kx, (B, C, H, W), dtype=jnp.float32)        # NCHW
    other = jax.random.normal(ko, (1, 3, H, W), dtype=jnp.float32)

    # torch.nn.Linear-style uniform init; weights stored as (in, out) = torch W.T.
    bound1 = 1.0 / jnp.sqrt(jnp.float32(C))
    w1 = jax.random.uniform(kw1, (C, 3), jnp.float32, -bound1, bound1)
    b1 = jax.random.uniform(kb1, (1, 3), jnp.float32, -bound1, bound1)

    bound2 = 1.0 / jnp.sqrt(jnp.float32(3))  # output_w * output_h * 3 = 3
    w2 = jax.random.uniform(kw2, (3, 1), jnp.float32, -bound2, bound2)
    b2 = jax.random.uniform(kb2, (1, 1), jnp.float32, -bound2, bound2)

    out = model_forward(x, other, w1, b1, w2, b2)
    out = jax.block_until_ready(out)

    ref = reference_forward(x, other, w1, b1, w2, b2)
    assert out.shape == (B, 1, H, W), out.shape
    assert jnp.allclose(out, ref, atol=1e-5, rtol=1e-5), "mismatch vs JAX reference"

    print("KERNEL_OK")
</pallas_src>

<mosaic_0001>
module attributes {stable_mosaic.version = 11 : i64} {
  func.func @model_kernel(%arg0: i32, %arg1: i32, %arg2: memref<1x3x32x128xf32, #tpu.memory_space<vmem>>, %arg3: memref<32x128xf32, #tpu.memory_space<vmem>>, %arg4: memref<3xf32, #tpu.memory_space<smem>>, %arg5: memref<1x32x128xf32, #tpu.memory_space<vmem>>) attributes {dimension_semantics = [#tpu.dimension_semantics<parallel>, #tpu.dimension_semantics<parallel>], iteration_bounds = array<i64: 1, 2>, scalar_prefetch = 0 : i64, scratch_operands = 0 : i64, tpu.core_type = #tpu.core_type<tc>, window_params = [{transform_indices = @transform_0, window_bounds = array<i64: 1, 3, 32, 128>}, {transform_indices = @transform_1, window_bounds = array<i64: 32, 128>}, {transform_indices = @transform_2, window_bounds = array<i64: 3>}, {transform_indices = @transform_3, window_bounds = array<i64: 1, 32, 128>}]} {
    %c0 = arith.constant 0 : index
    %c0_0 = arith.constant 0 : index
    %c0_1 = arith.constant 0 : index
    %c0_2 = arith.constant 0 : index
    %0 = vector.load %arg2[%c0, %c0_0, %c0_1, %c0_2] : memref<1x3x32x128xf32, #tpu.memory_space<vmem>>, vector<1x3x32x128xf32>
    %c0_3 = arith.constant 0 : index
    %c0_4 = arith.constant 0 : index
    %1 = vector.load %arg3[%c0_3, %c0_4] : memref<32x128xf32, #tpu.memory_space<vmem>>, vector<32x128xf32>
    %2 = vector.shape_cast %1 : vector<32x128xf32> to vector<1x32x128xf32>
    %3 = vector.extract_strided_slice %0 {offsets = [0, 0, 0, 0], sizes = [1, 1, 32, 128], strides = [1, 1, 1, 1]} : vector<1x3x32x128xf32> to vector<1x1x32x128xf32>
    %4 = vector.shape_cast %3 : vector<1x1x32x128xf32> to vector<1x32x128xf32>
    %c0_5 = arith.constant 0 : index
    %5 = memref.load %arg4[%c0_5] : memref<3xf32, #tpu.memory_space<smem>>
    %6 = vector.broadcast %5 : f32 to vector<1x32x128xf32>
    %7 = arith.mulf %4, %6 : vector<1x32x128xf32>
    %8 = arith.addf %2, %7 : vector<1x32x128xf32>
    %9 = vector.extract_strided_slice %0 {offsets = [0, 1, 0, 0], sizes = [1, 1, 32, 128], strides = [1, 1, 1, 1]} : vector<1x3x32x128xf32> to vector<1x1x32x128xf32>
    %10 = vector.shape_cast %9 : vector<1x1x32x128xf32> to vector<1x32x128xf32>
    %c1 = arith.constant 1 : index
    %11 = memref.load %arg4[%c1] : memref<3xf32, #tpu.memory_space<smem>>
    %12 = vector.broadcast %11 : f32 to vector<1x32x128xf32>
    %13 = arith.mulf %10, %12 : vector<1x32x128xf32>
    %14 = arith.addf %8, %13 : vector<1x32x128xf32>
    %15 = vector.extract_strided_slice %0 {offsets = [0, 2, 0, 0], sizes = [1, 1, 32, 128], strides = [1, 1, 1, 1]} : vector<1x3x32x128xf32> to vector<1x1x32x128xf32>
    %16 = vector.shape_cast %15 : vector<1x1x32x128xf32> to vector<1x32x128xf32>
    %c2 = arith.constant 2 : index
    %17 = memref.load %arg4[%c2] : memref<3xf32, #tpu.memory_space<smem>>
    %18 = vector.broadcast %17 : f32 to vector<1x32x128xf32>
    %19 = arith.mulf %16, %18 : vector<1x32x128xf32>
    %20 = arith.addf %14, %19 : vector<1x32x128xf32>
    %cst = arith.constant 5.000000e-01 : f32
    %21 = vector.broadcast %cst : f32 to vector<1x32x128xf32>
    %22 = arith.mulf %21, %20 : vector<1x32x128xf32>
    %23 = math.tanh %22 : vector<1x32x128xf32>
    %cst_6 = arith.constant 1.000000e+00 : f32
    %24 = vector.broadcast %cst_6 : f32 to vector<1x32x128xf32>
    %25 = arith.addf %23, %24 : vector<1x32x128xf32>
    %cst_7 = arith.constant 5.000000e-01 : f32
    %26 = vector.broadcast %cst_7 : f32 to vector<1x32x128xf32>
    %27 = arith.mulf %26, %25 : vector<1x32x128xf32>
    %c0_8 = arith.constant 0 : index
    %c0_9 = arith.constant 0 : index
    %c0_10 = arith.constant 0 : index
    %28 = vector.load %arg5[%c0_8, %c0_9, %c0_10] : memref<1x32x128xf32, #tpu.memory_space<vmem>>, vector<1x32x128xf32>
    tpu.vector_store %arg5[%c0_8, %c0_9, %c0_10], %27 {strides = array<i32>} : memref<1x32x128xf32, #tpu.memory_space<vmem>>, vector<1x32x128xf32>,
    return
  }
  func.func @transform_0(%arg0: i32, %arg1: i32) -> (i32, i32, i32, i32) {
    %c0_i32 = arith.constant 0 : i32
    %c0_i32_0 = arith.constant 0 : i32
    %c0_i32_1 = arith.constant 0 : i32
    return %arg1, %c0_i32, %arg0, %c0_i32_0 : i32, i32, i32, i32
  }
  func.func @transform_1(%arg0: i32, %arg1: i32) -> (i32, i32) {
    %c0_i32 = arith.constant 0 : i32
    %c0_i32_0 = arith.constant 0 : i32
    return %arg0, %c0_i32 : i32, i32
  }
  func.func @transform_2(%arg0: i32, %arg1: i32) -> i32 {
    %c0_i32 = arith.constant 0 : i32
    %c0_i32_0 = arith.constant 0 : i32
    return %c0_i32 : i32
  }
  func.func @transform_3(%arg0: i32, %arg1: i32) -> (i32, i32, i32) {
    %c0_i32 = arith.constant 0 : i32
    %c0_i32_0 = arith.constant 0 : i32
    return %arg1, %arg0, %c0_i32 : i32, i32, i32
  }
}

</mosaic_0001>

<bundles_post_ra>
// kernel: tpu_custom_call.1
= control target key start
LH: loop header
LB: loop body
LE: loop exit
PB: predicated region body
PF: predicated region fallthrough
CT: control target
= control target key end

     0   :  { %8 = vsyncpa [#allocation3], 0  ;;  %s1009_s0 = inlined_call_operand.hbm [shape: f32[2,3,32,128], index: 0, kind: input, shape index: {}]   ;;  %s1010_s1 = inlined_call_operand.hbm [shape: f32[32,128], index: 1, kind: input, shape index: {}]   ;;  %s1011_s2 = inlined_call_operand.vmem [shape: f32[3], index: 2, kind: input, shape index: {}]   ;;  %s1012_s3 = inlined_call_operand.hbm [shape: f32[2,32,128], index: 3, kind: output, shape index: {}]  }
   0x1   :  { %10 = vsyncpa [#allocation3 + $0x1], 0 }
   0x2   :  { %11 = vsyncpa [#allocation7], 0 }
   0x3   :  { %12 = vsyncpa [#allocation5], 0 }
   0x4   :  { %13 = vsyncpa [#allocation4], 0 }
   0x5   :  { %15 = vsyncpa [#allocation4 + $0x1], 0  ;;  %s750_s12 = smov 0   ;;  %s752_s13 = smov 0  }
   0x6   :  { %s754_s14 = smov 0   ;;  %s756_s15 = smov 0  }
   0x7   :  { %s758_s16 = smov 0   ;;  %s760_s17 = smov 0  }
   0x8 LB: > { %s440_s18 = sadd.s32 4294967295, %s720_s17   ;;  %s441_s19 = sadd.s32 4294967294, %s720_s17   ;;  %s720_s17 = sphi %s760_s17, %s21_s17   ;;  %s716_s16 = sphi %s758_s16, %s1035_s16   ;;  %s712_s15 = sphi %s756_s15, %s1034_s15   ;;  %s708_s14 = sphi %s754_s14, %s1033_s14   ;;  %s704_s13 = sphi %s752_s13, %s1032_s13   ;;  %s700_s12 = sphi %s750_s12, %s1031_s12  }
   0x9   : > { %p55_p0 = scmp.ne.s32.totalorder %s704_s13, %s700_s12  ;;  %p784_p1 = scmp.eq.s32.totalorder %s440_s18, 0 }
   0xa   : > { %p788_p2 = scmp.eq.s32.totalorder %s440_s18, 1  ;;  %p134_p3 = scmp.eq.s32.totalorder %s441_s19, 1 }
   0xb   : > { %s1017_s20 = scalar_select %p784_p1, 1, 0 }
   0xc   : > { %s1018_s21 = scalar_select %p788_p2, 1, 0 }
   0xd   : > { %p794_p4 = por %p784_p1, %p55_p0  ;;  %p442_p5 = scmp.ge.s32.totalorder %s720_s17, 1 }
   0xe   : > { %p799_p6 = por %p134_p3, %p55_p0  ;;  %p141_p7 = scmp.lt.s32.totalorder %s720_s17, 3 }
   0xf   : > { %s1019_s22 = scalar_select %p794_p4, 1, 0 }
  0x10   : > { %s1020_s23 = scalar_select %p799_p6, 1, 0 }
  0x11   : > { %p804_p8 = pnand %p442_p5, %p141_p7  ;;  %s722_s25 = smov [#allocation6]  }
  0x12   : > { %s156_s26 = sshll.u32 %s722_s25, 4  ;;  %s170_s29 = sshll.u32 %s1011_s2, 4  ;;  %s157_s26 = int_to_ptr.vmem [resolvable:$true] %s156_s26  ;;  %s820_s29 = int_to_ptr.vmem [resolvable:$true] %s170_s29 }
  0x13   : > { %s1021_s24 = scalar_select %p804_p8, 1, 0 }
  0x14   : > { %p474_p9 = pneg %p804_p8  ;;  %s557_s6 = scalar_lea.hbm %s1010_s1, 512 }
  0x15   : > { %p558_p12 = scmp.ne.s32.totalorder %s1010_s1, %s557_s6  ;;  %p564_p5 = scmp.lt.u32.totalorder %s557_s6, %s1010_s1 }
  0x16   : > { %p816_p11 = pnand %p474_p9, %p784_p1 }
  0x18   : > { %p559_p13 = pneg %p816_p11 }
  0x1a   : > { %p560_p0 = pnand %p559_p13, %p558_p12 }
  0x1c   : > { %p561_p3 = pneg %p560_p0 }
  0x1e   : > { %p566_p7 = pnand %p564_p5, %p561_p3 }
  0x20   : > { %569 = shalt.err (!%p566_p7)
}
  0x21   : > { %s570_s11 = scalar_lea.vmem %s157_s26, 512  ;;  %p578_p1 = scmp.lt.s32.totalorder %s157_s26, %s157_s26 }
  0x22   : > { %p571_p9 = scmp.ne.s32.totalorder %s157_s26, %s570_s11  ;;  %p579_p4 = scmp.lt.s32.totalorder %s570_s11, %s570_s11 }
  0x24   : > { %p573_p10 = pnand %p571_p9, %p559_p13  ;;  %p580_p8 = por %p579_p4, %p578_p1 }
  0x26   : > { %p574_p6 = pneg %p573_p10 }
  0x28   : > { %p581_p2 = pnand %p580_p8, %p574_p6 }
  0x2a   : > { %584 = shalt.err (!%p581_p2)
}
  0x2b   : > { %s723_s18 = smov 128   ;;  %s724_s19 = smov 8  }
  0x2c   : > { %477 = dma.hbm_to_vmem [thread:$0]  (!%p816_p11), %s1010_s1, 512, %s157_s26, [#allocation7], %s723_s18, %s723_s18, %s724_s19  }
  0x2d   : > { %s585_s28 = scalar_lea.vmem %s820_s29, 16  ;;  %p593_p4 = scmp.lt.s32.totalorder %s820_s29, %s820_s29 }
  0x2e   : > { %p586_p10 = scmp.ne.s32.totalorder %s820_s29, %s585_s28  ;;  %p594_p6 = scmp.lt.s32.totalorder %s585_s28, %s585_s28 }
  0x30   : > { %p588_p1 = pnand %p586_p10, %p559_p13  ;;  %p595_p8 = por %p594_p6, %p593_p4 }
  0x32   : > { %p589_p2 = pneg %p588_p1 }
  0x34   : > { %p596_p12 = pnand %p595_p8, %p589_p2 }
  0x36   : > { %599 = shalt.err (!%p596_p12)
}
  0x37   : > { %s725_s4 = smov [#allocation8]   ;;  %s30_s26 = sadd.s32 1, %s716_s16 }
  0x38   : > { %480 = dma.vmem_to_smem (!%p816_p11), %s820_s29, 16, %s725_s4, [#allocation5]  }
  0x39   : > { %s42_s5 = sadd.s32 1, %s708_s14  ;;  %p31_p13 = scmp.ge.s32.totalorder %s30_s26, 2 }
  0x3a   : > { %p49_p0 = scmp.ne.s32.totalorder %s708_s14, %s704_s13  ;;  %p50_p3 = scmp.eq.s32.totalorder %s720_s17, 0 }
  0x3b   : > { %p491_p5 = scmp.lt.s32.totalorder %s720_s17, 2  ;;  %s1037_s26 = smov (%p31_p13, %s30_s26), 0 }
  0x3c   : > { %p51_p7 = por %p50_p3, %p49_p0  ;;  %p1023_p9 = scmp.ne.s32.totalorder %s1018_s21, 0 }
  0x3d   : > { %s37_s6 = ssub.s32 %s716_s16, %s1037_s26  ;;  %s181_s7 = sand.u32 1, %s708_s14  }
  0x3e   : > { %p867_p10 = por %p1023_p9, %p49_p0  ;;  %p40_p1 = scmp.eq.s32.totalorder %s37_s6, 0 }
  0x3f   : > { %s459_s29 = smul.u32 96, %s181_s7  ;;  %p874_p11 = pnand %p491_p5, %p51_p7 }
  0x40   : > { %s879_s9 = scalar_select %p40_p1, %s708_s14, %s42_s5  }
  0x41   : > { %s460_s10 = smul.u32 1536, %s716_s16  ;;  %s185_s11 = scalar_lea.vmem [#allocation2], %s459_s29 }
  0x42   : > { %s194_s25 = sshll.u32 %s185_s11, 4  ;;  %s889_s4 = scalar_lea.sflag [#allocation3], %s181_s7  ;;  %s887_s25 = int_to_ptr.vmem [resolvable:$true] %s194_s25 }
  0x43   : > { %s885_s28 = scalar_lea.hbm %s1009_s0, %s460_s10  ;;  %p602_p4 = pneg %p874_p11 }
  0x44   : > { %s600_s6 = scalar_lea.hbm %s885_s28, 1536  ;;  %s605_s10 = scalar_lea.hbm %s1009_s0, 3072 }
  0x45   : > { %p601_p2 = scmp.ne.s32.totalorder %s885_s28, %s600_s6  ;;  %p606_p12 = scmp.lt.u32.totalorder %s885_s28, %s1009_s0 }
  0x46   : > { %p607_p13 = scmp.lt.u32.totalorder %s605_s10, %s600_s6  ;;  %p609_p3 = scmp.lt.u32.totalorder %s600_s6, %s885_s28 }
  0x47   : > { %p603_p6 = pnand %p602_p4, %p601_p2 }
  0x48   : > { %p608_p0 = por %p607_p13, %p606_p12 }
  0x49   : > { %p604_p8 = pneg %p603_p6 }
  0x4a   : > { %p610_p5 = por %p609_p3, %p608_p0 }
  0x4c   : > { %p611_p7 = pnand %p610_p5, %p604_p8 }
  0x4e   : > { %614 = shalt.err (!%p611_p7)
}
  0x4f   : > { %s615_s7 = scalar_lea.vmem %s887_s25, 1536  ;;  %s726_s27 = smov [#allocation2]  }
  0x50   : > { %p616_p9 = scmp.ne.s32.totalorder %s887_s25, %s615_s7  ;;  %s620_s5 = sshll.u32 %s726_s27, 4  ;;  %s621_s5 = int_to_ptr.vmem [resolvable:$false] %s620_s5 }
  0x51   : > { %s622_s29 = scalar_lea.vmem %s621_s5, 3072  ;;  %p623_p6 = scmp.lt.s32.totalorder %s887_s25, %s621_s5 }
  0x52   : > { %p618_p1 = pnand %p616_p9, %p602_p4  ;;  %p624_p12 = scmp.lt.s32.totalorder %s622_s29, %s615_s7 }
  0x54   : > { %p619_p2 = pneg %p618_p1  ;;  %p625_p13 = por %p624_p12, %p623_p6 }
  0x56   : > { %p626_p0 = pnand %p625_p13, %p619_p2 }
  0x58   : > { %629 = shalt.err (!%p626_p0)
}
  0x59   : > { %484 = dma.hbm_to_vmem [thread:$0]  (!%p874_p11), %s885_s28, 1536, %s887_s25, %s889_s4, %s723_s18, %s723_s18, %s724_s19  }
  0x5a   : > { %p1026_p4 = scmp.ne.s32.totalorder %s1021_s24, 0 }
  0x5b   : > { %s923_s6 = sand.u32 (!%p1026_p4), 1, %s704_s13   ;;  %p1027_p8 = scmp.ne.s32.totalorder (!%p1026_p4), %s1019_s22, 0 }
  0x5c   : > { %206 = sbr.rel (%p1026_p4) target bundleno = 157 (0x9d), region = 32  ;;  %s209_s11 = scalar_lea.sflag (!%p1026_p4), [#allocation3], %s923_s6 }
  0x5d   : > { %s461_s10 = smul.u32 (!%p1026_p4), 96, %s923_s6 }
  0x5f   : > { %s927_s21 = scalar_lea.vmem (!%p1026_p4), [#allocation2], %s461_s10 }
  0x63   : > { %683 = dma.done.wait (%p1027_p8), %s209_s11, 1536  }
  0x64   : > { %685 = vsyncadd (%p1027_p8), %s209_s11, 4294965760  ;;  %p1028_p11 = scmp.ne.s32.totalorder %s1017_s20, 0 }
  0x66   : > { %687 = dma.done.wait (%p1028_p11), [#allocation7], 512  }
  0x67   : > { %689 = vsyncadd (%p1028_p11), [#allocation7], 4294966784 }
  0x68   : > { %691 = dma.done.wait (%p1028_p11), [#allocation5], 16  }
  0x69   : > { %693 = vsyncadd (%p1028_p11), [#allocation5], 4294967280 }
  0x6a   : > { %225 = sfence }
  0x6b   : > { %s263_s24 = sld [smem:[#allocation8]]  ;;  %s451_s22 = sld [smem:[#allocation8 + $0x1]]  ;;  %v247_v0 = vld [vmem:[%s927_s21] sm:$0xff]  ;;  %v248_v3 = vld [vmem:[%s927_s21 + $0x8] sm:$0xff]  ;;  %v249_v4 = vld [vmem:[%s927_s21 + $0x10] sm:$0xff] }
  0x6c   : > { %s452_s18 = sld [smem:[#allocation8 + $0x2]]  ;;  %v251_v1 = vld [vmem:[%s927_s21 + $0x20] sm:$0xff]  ;;  %v252_v6 = vld [vmem:[%s927_s21 + $0x28] sm:$0xff]  ;;  %v253_v7 = vld [vmem:[%s927_s21 + $0x30] sm:$0xff]  ;;  %s450_s20 = sshll.u32 %s923_s6, 5 }
  0x6d   : > { %v255_v2 = vld [vmem:[%s927_s21 + $0x40] sm:$0xff]  ;;  %v256_v9 = vld [vmem:[%s927_s21 + $0x48] sm:$0xff]  ;;  %v257_v11 = vld [vmem:[%s927_s21 + $0x50] sm:$0xff]  ;;  %s243_s19 = scalar_lea.vmem [#allocation9], %s450_s20  ;;  %s458_s25 = sshll.u32 %s712_s15, 9 }
  0x6e   : > { %v259_v5 = vld [vmem:[#allocation6] sm:$0xff]  ;;  %v260_v10 = vld [vmem:[#allocation6 + $0x8] sm:$0xff]  ;;  %v261_v15 = vld [vmem:[#allocation6 + $0x10] sm:$0xff]  ;;  %s329_s8 = sshll.u32 %s243_s19, 4  ;;  %s960_s7 = scalar_lea.hbm %s1012_s3, %s458_s25  ;;  %s955_s8 = int_to_ptr.vmem [resolvable:$true] %s329_s8 }
  0x6f   : > { %v250_v17 = vld [vmem:[%s927_s21 + $0x18] sm:$0xff]  ;;  %s314_s27 = scalar_lea.sflag [#allocation4], %s923_s6  ;;  %s630_s15 = scalar_lea.vmem %s955_s8, 512 }
  0x70   : > { %v254_v18 = vld [vmem:[%s927_s21 + $0x38] sm:$0xff]  ;;  %p631_p3 = scmp.ne.s32.totalorder %s955_s8, %s630_s15  ;;  %s727_s5 = smov [#allocation9]  }
  0x71   : > { %v264_v8 = vstv %s263_s24  ;;  %v274_v13 = vstv %s451_s22  ;;  %v258_v27 = vld [vmem:[%s927_s21 + $0x58] sm:$0xff]  ;;  %s634_s29 = sshll.u32 %s727_s5, 4  ;;  %s635_s29 = int_to_ptr.vmem [resolvable:$false] %s634_s29 }
  0x72   : > { %v265_v12 = vmul.f32 %v264_v8, %v247_v0  ;;  %v266_v14 = vmul.f32 %v264_v8, %v248_v3  ;;  %v267_v16 = vmul.f32 %v264_v8, %v249_v4  ;;  %v275_v19 = vmul.f32 %v274_v13, %v251_v1  ;;  %v262_v28 = vld [vmem:[#allocation6 + $0x18] sm:$0xff]  ;;  %p632_p5 = pnand %p631_p3, %p867_p10  ;;  %s636_s10 = scalar_lea.vmem %s635_s29, 1024 }
  0x73   : > { %v284_v20 = vstv %s452_s18  ;;  %v276_v21 = vmul.f32 %v274_v13, %v252_v6  ;;  %v277_v22 = vmul.f32 %v274_v13, %v253_v7  ;;  %v268_v31 = vmul.f32 %v264_v8, %v250_v17  ;;  %p637_p9 = scmp.lt.s32.totalorder %s955_s8, %s635_s29  ;;  %p638_p1 = scmp.lt.s32.totalorder %s636_s10, %s630_s15 }
  0x74   : > { %v269_v23 = vadd.f32 %v265_v12, %v259_v5  ;;  %v285_v24 = vmul.f32 %v284_v20, %v255_v2  ;;  %v270_v25 = vadd.f32 %v266_v14, %v260_v10  ;;  %v286_v26 = vmul.f32 %v284_v20, %v256_v9  ;;  %p633_p7 = pneg %p632_p5 }
  0x75   : > { %v271_v29 = vadd.f32 %v267_v16, %v261_v15  ;;  %v287_v30 = vmul.f32 %v284_v20, %v257_v11  ;;  %v278_v32 = vmul.f32 %v274_v13, %v254_v18  ;;  %v272_v36 = vadd.f32 %v268_v31, %v262_v28  ;;  %p639_p2 = por %p638_p1, %p637_p9 }
  0x76   : > { %v279_v33 = vadd.f32 %v275_v19, %v269_v23  ;;  %v280_v34 = vadd.f32 %v276_v21, %v270_v25  ;;  %v288_v37 = vmul.f32 %v284_v20, %v258_v27 }
  0x77   : > { %v281_v35 = vadd.f32 %v277_v22, %v271_v29  ;;  %v282_v41 = vadd.f32 %v278_v32, %v272_v36  ;;  %p640_p6 = pnand %p639_p2, %p633_p7 }
  0x78   : > { %v289_v38 = vadd.f32 %v285_v24, %v279_v33  ;;  %v290_v39 = vadd.f32 %v286_v26, %v280_v34 }
  0x79   : > { %v291_v40 = vadd.f32 %v287_v30, %v281_v35  ;;  %v292_v45 = vadd.f32 %v288_v37, %v282_v41 }
  0x7a   : > { %v293_v42 = vmul.f32 0.5, %v289_v38  ;;  %v294_v43 = vmul.f32 0.5, %v290_v39 }
  0x7b   : > { %v295_v44 = vmul.f32 0.5, %v291_v40  ;;  %v296_v46 = vmul.f32 0.5, %v292_v45 }
  0x7c   : > { %549 = vtanh.f32 %v293_v42 }
  0x7d   : > { %551 = vtanh.f32 %v294_v43 }
  0x7e   : > { %553 = vtanh.f32 %v295_v44 }
  0x7f   : > { %555 = vtanh.f32 %v296_v46 }
  0x86   : > { %v550_v47 = vpop.eup %549 }
  0x87   : > { %v552_v48 = vpop.eup %551  ;;  %v301_v49 = vadd.f32 1.0, %v550_v47 }
  0x88   : > { %v554_v50 = vpop.eup %553  ;;  %v302_v51 = vadd.f32 1.0, %v552_v48 }
  0x89   : > { %v556_v52 = vpop.eup %555  ;;  %v305_v53 = vmul.f32 0.5, %v301_v49  ;;  %v303_v54 = vadd.f32 1.0, %v554_v50 }
  0x8a   : > { %v306_v55 = vmul.f32 0.5, %v302_v51  ;;  %v304_v56 = vadd.f32 1.0, %v556_v52 }
  0x8b   : > { %309 = vst [vmem:[%s243_s19] sm:$0xff] %v305_v53  ;;  %v307_v57 = vmul.f32 0.5, %v303_v54 }
  0x8c   : > { %310 = vst [vmem:[%s243_s19 + $0x8] sm:$0xff] %v306_v55  ;;  %v308_v58 = vmul.f32 0.5, %v304_v56 }
  0x8d   : > { %311 = vst [vmem:[%s243_s19 + $0x10] sm:$0xff] %v307_v57 }
  0x8e   : > { %312 = vst [vmem:[%s243_s19 + $0x18] sm:$0xff] %v308_v58 }
  0x8f   : > { %643 = shalt.err (!%p640_p6)
}
  0x90   : > { %s644_s11 = scalar_lea.hbm %s960_s7, 512  ;;  %s648_s22 = scalar_lea.hbm %s1012_s3, 1024 }
  0x91   : > { %p645_p12 = scmp.ne.s32.totalorder %s960_s7, %s644_s11  ;;  %p649_p4 = scmp.lt.u32.totalorder %s960_s7, %s1012_s3 }
  0x92   : > { %p650_p8 = scmp.lt.u32.totalorder %s648_s22, %s644_s11  ;;  %p652_p3 = scmp.lt.u32.totalorder %s644_s11, %s960_s7 }
  0x93   : > { %p646_p13 = pnand %p645_p12, %p867_p10 }
  0x94   : > { %p651_p11 = por %p650_p8, %p649_p4 }
  0x95   : > { %p647_p0 = pneg %p646_p13 }
  0x96   : > { %p653_p5 = por %p652_p3, %p651_p11 }
  0x98   : > { %p654_p7 = pnand %p653_p5, %p647_p0 }
  0x9a   : > { %657 = shalt.err (!%p654_p7)
}
  0x9b   : > { %s728_s19 = smov 128   ;;  %s729_s25 = smov 8  }
  0x9c   : > { %472 = dma.vmem_to_hbm [thread:$0]  (%p867_p10), %s955_s8, 512, %s960_s7, %s314_s27, %s728_s19, %s728_s19, %s729_s25  }
  0x9d PF: > { %s344_s28 = sand.u32 1, %s700_s12   ;;  %p1029_p9 = scmp.ne.s32.totalorder %s1020_s23, 0 }
  0x9e   : > { %p1030_p1 = scmp.ge.s32.totalorder %s720_s17, 2  ;;  %s345_s4 = scalar_lea.sflag [#allocation4], %s344_s28 }
  0xa0   : > { %p486_p2 = pnand %p1030_p1, %p1029_p9 }
  0xa2   : > { %695 = dma.done.wait (!%p486_p2), %s345_s4, 512  }
  0xa3   : > { %697 = vsyncadd (!%p486_p2), %s345_s4, 4294966784  ;;  %s21_s17 = sadd.s32 1, %s720_s17   ;;  %s1031_s12 = smov %s704_s13 }
  0xa4   : > { %p18_p6 = scmp.ge.s32.totalorder %s21_s17, 4   ;;  %s1032_s13 = smov %s708_s14 }
  0xa5   : > { %s1033_s14 = smov %s879_s9  ;;  %s1034_s15 = smov %s716_s16 }
  0xa6   : > { %s1035_s16 = smov %s1037_s26  ;;  %20 = sbr.rel (!%p18_p6) target bundleno = 8 (0x8), region = 87 }
  0xad   :  { %350 = vsyncpa [#allocation3], 1 }
  0xae   :  { %352 = vsyncpa [#allocation3 + $0x1], 1 }
  0xaf   :  { %353 = vsyncpa [#allocation7], 1 }
  0xb0   :  { %354 = vsyncpa [#allocation4], 1 }
  0xb1   :  { %356 = vsyncpa [#allocation4 + $0x1], 1 }
  0xb2   :  { %357 = vsyncpa [#allocation5], 1 }
  0xb3   :  { %359 = vsyncpa [#allocation5 + $0x1], 1 }

</bundles_post_ra>
